<compile_context>
chip_gen: v7x
topology: tpu7x:2x2x1
jax: 0.10.0
libtpu: 0.0.40
codegen_flags: <defaults>
</compile_context>

<pallas_src>
import jax
import jax.numpy as jnp
from jax.experimental import pallas as pl
from jax.experimental.pallas import tpu as pltpu

INPUT_SIZE = 21
HIDDEN_LAYER_SIZES = (64, 32)   # HIDDEN_LAYER_SIZES is undefined in the source snippet
BN_EPS = 1e-5


def diabetes_nn_kernel(x_ref, w1_ref, b1_ref, w2_ref, b2_ref, w3_ref,
                       a1_ref, a2_ref, b3_ref, o_ref):
    """One batch tile (batch on the lane axis) of the fused, BN-folded MLP.

    x_ref : (F, tm)   VMEM bf16  transposed input tile
    w1_ref: (H1, F)   VMEM bf16  W1^T with feature_weights & BN1 folded in
    b1_ref: (H1, 1)   VMEM f32   fused Linear1+BN1 bias (column)
    w2_ref: (H2, H1)  VMEM bf16  W2^T with BN2 folded in
    b2_ref: (H2, 1)   VMEM f32   fused Linear2+BN2 bias (column)
    w3_ref: (H2, 1)   VMEM f32   output weight column
    a1_ref, a2_ref, b3_ref: (1,) SMEM scalars (PReLU alphas, output bias)
    o_ref : (1, tm)   VMEM f32   lane-dense logits row
    """
    # Hidden layer 1: fused Linear+BN (bf16 MXU, f32 accumulate) -> bias -> PReLU (f32 VPU).
    h = jnp.dot(w1_ref[...], x_ref[...], preferred_element_type=jnp.float32)   # (H1, tm)
    h = h + b1_ref[...]
    a1 = a1_ref[0]
    h = jnp.where(h >= 0.0, h, a1 * h)

    # Hidden layer 2: fused Linear+BN -> bias -> PReLU.
    h = jnp.dot(w2_ref[...], h.astype(jnp.bfloat16),
                preferred_element_type=jnp.float32)                            # (H2, tm)
    h = h + b2_ref[...]
    a2 = a2_ref[0]
    h = jnp.where(h >= 0.0, h, a2 * h)

    # Output projection (H2 -> 1): VPU multiply + sublane (XLU) reduce — no MXU pass.
    o_ref[...] = jnp.sum(h * w3_ref[...], axis=0, keepdims=True) + b3_ref[0]


def diabetes_nn_forward(x, params, *, tile_m=2048):
    """x: (B, INPUT_SIZE) float32.  params: dict of arrays (see init_params)."""
    B, F = x.shape
    H1, H2 = HIDDEN_LAYER_SIZES

    # ---- One-time JAX glue: fold feature_weights + eval-mode BN into the Linears ----
    def bn_fold(gamma, beta, mean, var):
        scale = gamma / jnp.sqrt(var + BN_EPS)
        shift = beta - mean * scale
        return scale, shift

    s1, t1 = bn_fold(params["bn1_gamma"], params["bn1_beta"],
                     params["bn1_mean"], params["bn1_var"])
    s2, t2 = bn_fold(params["bn2_gamma"], params["bn2_beta"],
                     params["bn2_mean"], params["bn2_var"])

    # Transposed (batch-on-lanes) layout:
    #   h1 = (s1 * W1^T * fw) @ x^T   -> (H1, B)
    w1t = (s1[:, None] * params["w1"].T * params["feature_weights"][None, :]
           ).astype(jnp.bfloat16)                                   # (H1, F)
    b1c = (params["b1"] * s1 + t1)[:, None].astype(jnp.float32)     # (H1, 1)
    w2t = (s2[:, None] * params["w2"].T).astype(jnp.bfloat16)       # (H2, H1)
    b2c = (params["b2"] * s2 + t2)[:, None].astype(jnp.float32)     # (H2, 1)
    w3c = params["w3"].astype(jnp.float32)                          # (H2, 1)
    b3 = params["b3"].reshape(1).astype(jnp.float32)                # (1,) SMEM
    a1 = params["alpha1"].reshape(1).astype(jnp.float32)            # (1,) SMEM
    a2 = params["alpha2"].reshape(1).astype(jnp.float32)            # (1,) SMEM

    xt = x.T.astype(jnp.bfloat16)                                   # (F, B) lane-dense batch

    # ---- Batch tile on the lane axis: a multiple of 128, or the full batch if small.
    # No padding of x: the last block may overhang; OOB output writes are masked and
    # the garbage tail lanes are never part of the (1, B) output we slice.
    if B < 256:
        tm = B                                        # one full-batch block (full-dim lane)
    else:
        half = max(128, (B // 2) // 128 * 128)        # >= 2 grid steps (v7x: use both TCs)
        tm = max(128, min(tile_m, half))
    grid = (pl.cdiv(B, tm),)

    smem_spec = pl.BlockSpec(memory_space=pltpu.MemorySpace.SMEM)
    in_specs = [
        pl.BlockSpec((F, tm), lambda i: (0, i)),      # x^T tile (pipelined over batch)
        pl.BlockSpec((H1, F), lambda i: (0, 0)),      # VMEM-resident weights / biases
        pl.BlockSpec((H1, 1), lambda i: (0, 0)),
        pl.BlockSpec((H2, H1), lambda i: (0, 0)),
        pl.BlockSpec((H2, 1), lambda i: (0, 0)),
        pl.BlockSpec((H2, 1), lambda i: (0, 0)),
        smem_spec,                                    # alpha1
        smem_spec,                                    # alpha2
        smem_spec,                                    # b3
    ]
    out_specs = pl.BlockSpec((1, tm), lambda i: (0, i))   # lane-dense logits row

    weight_bytes = 2 * (F * H1 + H1 * H2) + 4 * (H1 + H2 + H2 + 3)
    cost = pl.CostEstimate(
        flops=2 * B * (F * H1 + H1 * H2 + H2),
        transcendentals=0,
        bytes_accessed=2 * B * F + 4 * B + weight_bytes,
    )

    out = pl.pallas_call(
        diabetes_nn_kernel,
        out_shape=jax.ShapeDtypeStruct((1, B), jnp.float32),
        grid=grid,
        in_specs=in_specs,
        out_specs=out_specs,
        compiler_params=pltpu.CompilerParams(
            dimension_semantics=("parallel",),
        ),
        cost_estimate=cost,
    )(xt, w1t, b1c, w2t, b2c, w3c, a1, a2, b3)

    return out[0, :, None]                             # (B, 1)


def init_params(key):
    """Deterministic synthetic parameters matching the module's shapes."""
    F = INPUT_SIZE
    H1, H2 = HIDDEN_LAYER_SIZES
    ks = jax.random.split(key, 10)

    def linear_init(k, fan_in, fan_out):
        # PyTorch default: U(-1/sqrt(fan_in), 1/sqrt(fan_in))
        bound = 1.0 / jnp.sqrt(jnp.float32(fan_in))
        kw, kb = jax.random.split(k)
        w = jax.random.uniform(kw, (fan_in, fan_out), jnp.float32, -bound, bound)
        b = jax.random.uniform(kb, (fan_out,), jnp.float32, -bound, bound)
        return w, b

    w1, b1 = linear_init(ks[0], F, H1)
    w2, b2 = linear_init(ks[1], H1, H2)
    w3, b3 = linear_init(ks[2], H2, 1)

    params = {
        "feature_weights": jnp.ones((F,), jnp.float32),   # nn.Parameter(torch.ones(input_size))
        "w1": w1, "b1": b1,
        "bn1_gamma": jnp.ones((H1,), jnp.float32),
        "bn1_beta": jnp.zeros((H1,), jnp.float32),
        "bn1_mean": 0.1 * jax.random.normal(ks[3], (H1,), jnp.float32),
        "bn1_var": 1.0 + 0.1 * jax.random.uniform(ks[4], (H1,), jnp.float32),
        "alpha1": jnp.array([0.25], jnp.float32),          # PReLU default init
        "w2": w2, "b2": b2,
        "bn2_gamma": jnp.ones((H2,), jnp.float32),
        "bn2_beta": jnp.zeros((H2,), jnp.float32),
        "bn2_mean": 0.1 * jax.random.normal(ks[5], (H2,), jnp.float32),
        "bn2_var": 1.0 + 0.1 * jax.random.uniform(ks[6], (H2,), jnp.float32),
        "alpha2": jnp.array([0.25], jnp.float32),
        "w3": w3, "b3": b3,
    }
    return params


def reference_forward(x, params):
    """Pure-JAX (f32) reference of the same eval-mode forward (for sanity check)."""
    h = x * params["feature_weights"][None, :]

    def block(h, w, b, g, be, m, v, a):
        h = h @ w + b[None, :]
        h = g[None, :] * (h - m[None, :]) / jnp.sqrt(v[None, :] + BN_EPS) + be[None, :]
        return jnp.where(h >= 0, h, a[0] * h)

    h = block(h, params["w1"], params["b1"], params["bn1_gamma"], params["bn1_beta"],
              params["bn1_mean"], params["bn1_var"], params["alpha1"])
    h = block(h, params["w2"], params["b2"], params["bn2_gamma"], params["bn2_beta"],
              params["bn2_mean"], params["bn2_var"], params["alpha2"])
    return h @ params["w3"] + params["b3"][None, :]


if __name__ == "__main__":
    key = jax.random.PRNGKey(0)
    kx, kp = jax.random.split(key)

    B = 8
    x = jax.random.normal(kx, (B, INPUT_SIZE), jnp.float32)
    params = init_params(kp)

    out = diabetes_nn_forward(x, params)
    out = jax.block_until_ready(out)

    ref = reference_forward(x, params)
    assert out.shape == (B, 1)
    # bf16 matmul inputs vs. f32 reference -> loosened tolerance (per review).
    assert jnp.allclose(out, ref, atol=5e-2, rtol=5e-2), "mismatch vs reference"

    print("KERNEL_OK")
</pallas_src>

<mosaic_0001>
module attributes {stable_mosaic.version = 11 : i64} {
  func.func @diabetes_nn_kernel(%arg0: i32, %arg1: memref<21x8xbf16, #tpu.memory_space<vmem>>, %arg2: memref<64x21xbf16, #tpu.memory_space<vmem>>, %arg3: memref<64x1xf32, #tpu.memory_space<vmem>>, %arg4: memref<32x64xbf16, #tpu.memory_space<vmem>>, %arg5: memref<32x1xf32, #tpu.memory_space<vmem>>, %arg6: memref<32x1xf32, #tpu.memory_space<vmem>>, %arg7: memref<1xf32, #tpu.memory_space<smem>>, %arg8: memref<1xf32, #tpu.memory_space<smem>>, %arg9: memref<1xf32, #tpu.memory_space<smem>>, %arg10: memref<1x8xf32, #tpu.memory_space<vmem>>) attributes {dimension_semantics = [#tpu.dimension_semantics<parallel>], iteration_bounds = array<i64: 1>, scalar_prefetch = 0 : i64, scratch_operands = 0 : i64, tpu.core_type = #tpu.core_type<tc>, window_params = [{transform_indices = @transform_0, window_bounds = array<i64: 21, 8>}, {pipeline_mode = #tpu.pipeline_mode<synchronous>, transform_indices = @transform_1, window_bounds = array<i64: 64, 21>}, {pipeline_mode = #tpu.pipeline_mode<synchronous>, transform_indices = @transform_2, window_bounds = array<i64: 64, 1>}, {pipeline_mode = #tpu.pipeline_mode<synchronous>, transform_indices = @transform_3, window_bounds = array<i64: 32, 64>}, {pipeline_mode = #tpu.pipeline_mode<synchronous>, transform_indices = @transform_4, window_bounds = array<i64: 32, 1>}, {pipeline_mode = #tpu.pipeline_mode<synchronous>, transform_indices = @transform_5, window_bounds = array<i64: 32, 1>}, {transform_indices = @transform_6, window_bounds = array<i64: 1>}, {transform_indices = @transform_7, window_bounds = array<i64: 1>}, {transform_indices = @transform_8, window_bounds = array<i64: 1>}, {transform_indices = @transform_9, window_bounds = array<i64: 1, 8>}]} {
    %c0 = arith.constant 0 : index
    %c0_0 = arith.constant 0 : index
    %0 = vector.load %arg2[%c0, %c0_0] : memref<64x21xbf16, #tpu.memory_space<vmem>>, vector<64x21xbf16>
    %c0_1 = arith.constant 0 : index
    %c0_2 = arith.constant 0 : index
    %1 = vector.load %arg1[%c0_1, %c0_2] : memref<21x8xbf16, #tpu.memory_space<vmem>>, vector<21x8xbf16>
    %cst = arith.constant dense<0.000000e+00> : vector<64x8xf32>
    %2 = tpu.matmul %0, %1, %cst {dimension_numbers = #tpu.dot_dimension_numbers<[1], [0], [0], [1], [0, 0, 1, 1], [], []>} : vector<64x21xbf16>, vector<21x8xbf16>, vector<64x8xf32> -> vector<64x8xf32>
    %c0_3 = arith.constant 0 : index
    %c0_4 = arith.constant 0 : index
    %3 = vector.load %arg3[%c0_3, %c0_4] : memref<64x1xf32, #tpu.memory_space<vmem>>, vector<64x1xf32>
    %4 = vector.broadcast %3 : vector<64x1xf32> to vector<64x8xf32>
    %5 = arith.addf %2, %4 : vector<64x8xf32>
    %c0_5 = arith.constant 0 : index
    %6 = memref.load %arg7[%c0_5] : memref<1xf32, #tpu.memory_space<smem>>
    %cst_6 = arith.constant 0.000000e+00 : f32
    %7 = vector.broadcast %cst_6 : f32 to vector<64x8xf32>
    %8 = arith.cmpf oge, %5, %7 : vector<64x8xf32>
    %9 = vector.broadcast %6 : f32 to vector<64x8xf32>
    %10 = arith.mulf %9, %5 : vector<64x8xf32>
    %11 = arith.select %8, %5, %10 : vector<64x8xi1>, vector<64x8xf32>
    %c0_7 = arith.constant 0 : index
    %c0_8 = arith.constant 0 : index
    %12 = vector.load %arg4[%c0_7, %c0_8] : memref<32x64xbf16, #tpu.memory_space<vmem>>, vector<32x64xbf16>
    %13 = arith.truncf %11 : vector<64x8xf32> to vector<64x8xbf16>
    %cst_9 = arith.constant dense<0.000000e+00> : vector<32x8xf32>
    %14 = tpu.matmul %12, %13, %cst_9 {dimension_numbers = #tpu.dot_dimension_numbers<[1], [0], [0], [1], [0, 0, 1, 1], [], []>} : vector<32x64xbf16>, vector<64x8xbf16>, vector<32x8xf32> -> vector<32x8xf32>
    %c0_10 = arith.constant 0 : index
    %c0_11 = arith.constant 0 : index
    %15 = vector.load %arg5[%c0_10, %c0_11] : memref<32x1xf32, #tpu.memory_space<vmem>>, vector<32x1xf32>
    %16 = vector.broadcast %15 : vector<32x1xf32> to vector<32x8xf32>
    %17 = arith.addf %14, %16 : vector<32x8xf32>
    %c0_12 = arith.constant 0 : index
    %18 = memref.load %arg8[%c0_12] : memref<1xf32, #tpu.memory_space<smem>>
    %cst_13 = arith.constant 0.000000e+00 : f32
    %19 = vector.broadcast %cst_13 : f32 to vector<32x8xf32>
    %20 = arith.cmpf oge, %17, %19 : vector<32x8xf32>
    %21 = vector.broadcast %18 : f32 to vector<32x8xf32>
    %22 = arith.mulf %21, %17 : vector<32x8xf32>
    %23 = arith.select %20, %17, %22 : vector<32x8xi1>, vector<32x8xf32>
    %c0_14 = arith.constant 0 : index
    %c0_15 = arith.constant 0 : index
    %24 = vector.load %arg6[%c0_14, %c0_15] : memref<32x1xf32, #tpu.memory_space<vmem>>, vector<32x1xf32>
    %25 = vector.broadcast %24 : vector<32x1xf32> to vector<32x8xf32>
    %26 = arith.mulf %23, %25 : vector<32x8xf32>
    %cst_16 = arith.constant dense<0.000000e+00> : vector<8xf32>
    %27 = vector.multi_reduction <add>, %26, %cst_16 [0] : vector<32x8xf32> to vector<8xf32>
    %28 = vector.shape_cast %27 : vector<8xf32> to vector<1x8xf32>
    %c0_17 = arith.constant 0 : index
    %29 = memref.load %arg9[%c0_17] : memref<1xf32, #tpu.memory_space<smem>>
    %30 = vector.broadcast %29 : f32 to vector<1x8xf32>
    %31 = arith.addf %28, %30 : vector<1x8xf32>
    %c0_18 = arith.constant 0 : index
    %c0_19 = arith.constant 0 : index
    %32 = vector.load %arg10[%c0_18, %c0_19] : memref<1x8xf32, #tpu.memory_space<vmem>>, vector<1x8xf32>
    tpu.vector_store %arg10[%c0_18, %c0_19], %31 {strides = array<i32>} : memref<1x8xf32, #tpu.memory_space<vmem>>, vector<1x8xf32>,
    return
  }
  func.func @transform_0(%arg0: i32) -> (i32, i32) {
    %c0_i32 = arith.constant 0 : i32
    %c0_i32_0 = arith.constant 0 : i32
    return %c0_i32, %arg0 : i32, i32
  }
  func.func @transform_1(%arg0: i32) -> (i32, i32) {
    %c0_i32 = arith.constant 0 : i32
    %c0_i32_0 = arith.constant 0 : i32
    %c0_i32_1 = arith.constant 0 : i32
    return %c0_i32, %c0_i32_0 : i32, i32
  }
  func.func @transform_2(%arg0: i32) -> (i32, i32) {
    %c0_i32 = arith.constant 0 : i32
    %c0_i32_0 = arith.constant 0 : i32
    %c0_i32_1 = arith.constant 0 : i32
    return %c0_i32, %c0_i32_0 : i32, i32
  }
  func.func @transform_3(%arg0: i32) -> (i32, i32) {
    %c0_i32 = arith.constant 0 : i32
    %c0_i32_0 = arith.constant 0 : i32
    %c0_i32_1 = arith.constant 0 : i32
    return %c0_i32, %c0_i32_0 : i32, i32
  }
  func.func @transform_4(%arg0: i32) -> (i32, i32) {
    %c0_i32 = arith.constant 0 : i32
    %c0_i32_0 = arith.constant 0 : i32
    %c0_i32_1 = arith.constant 0 : i32
    return %c0_i32, %c0_i32_0 : i32, i32
  }
  func.func @transform_5(%arg0: i32) -> (i32, i32) {
    %c0_i32 = arith.constant 0 : i32
    %c0_i32_0 = arith.constant 0 : i32
    %c0_i32_1 = arith.constant 0 : i32
    return %c0_i32, %c0_i32_0 : i32, i32
  }
  func.func @transform_6(%arg0: i32) -> i32 {
    %c0_i32 = arith.constant 0 : i32
    %c0_i32_0 = arith.constant 0 : i32
    return %c0_i32 : i32
  }
  func.func @transform_7(%arg0: i32) -> i32 {
    %c0_i32 = arith.constant 0 : i32
    %c0_i32_0 = arith.constant 0 : i32
    return %c0_i32 : i32
  }
  func.func @transform_8(%arg0: i32) -> i32 {
    %c0_i32 = arith.constant 0 : i32
    %c0_i32_0 = arith.constant 0 : i32
    return %c0_i32 : i32
  }
  func.func @transform_9(%arg0: i32) -> (i32, i32) {
    %c0_i32 = arith.constant 0 : i32
    %c0_i32_0 = arith.constant 0 : i32
    return %c0_i32, %arg0 : i32, i32
  }
}

</mosaic_0001>

<bundles_post_ra>
// kernel: tpu_custom_call.1
= control target key start
LH: loop header
LB: loop body
LE: loop exit
PB: predicated region body
PF: predicated region fallthrough
CT: control target
= control target key end

     0   :  { %vm138_vm0 = vcmask 1041408   ;;  %vm139_vm1 = vcmask 1042432   ;;  %v496_v3 = vmov 65535   ;;  %vm125_vm2 = vcmask 171008   ;;  %s648_s0 = inlined_call_operand.vmem [shape: bf16[21,8], index: 0, kind: input, shape index: {}]   ;;  %s649_s1 = inlined_call_operand.vmem [shape: bf16[64,21], index: 1, kind: input, shape index: {}]   ;;  %s650_s2 = inlined_call_operand.vmem [shape: f32[64,1], index: 2, kind: input, shape index: {}]   ;;  %s651_s3 = inlined_call_operand.vmem [shape: bf16[32,64], index: 3, kind: input, shape index: {}]   ;;  %s652_s4 = inlined_call_operand.vmem [shape: f32[32,1], index: 4, kind: input, shape index: {}]   ;;  %s653_s5 = inlined_call_operand.vmem [shape: f32[32,1], index: 5, kind: input, shape index: {}]   ;;  %s654_s6 = inlined_call_operand.<no memory space> [shape: f32[1], index: 6, kind: input, shape index: {}]   ;;  %s655_s7 = inlined_call_operand.<no memory space> [shape: f32[1], index: 7, kind: input, shape index: {}]   ;;  %s656_s8 = inlined_call_operand.<no memory space> [shape: f32[1], index: 8, kind: input, shape index: {}]   ;;  %s657_s9 = inlined_call_operand.hbm [shape: f32[1,8], index: 9, kind: output, shape index: {}]  }
   0x1   :  { %v464_v0 = vld [vmem:[%s648_s0] sm:$0xff]   ;;  %v465_v1 = vld [vmem:[%s648_s0 + $0x8] ss:$0 sps:$4 sm:$0x77]   ;;  %v140_v4 = vsel %vm138_vm0, 4294967295, %v496_v3  ;;  %v497_v7 = vmov 0  }
   0x2   :  { %435 = vmatprep.subr.bf16.mxu0 %v464_v0  ;;  %v466_v2 = vld [vmem:[%s649_s1] sm:$0xff]   ;;  %v141_v5 = vsel %vm139_vm1, %v140_v4, 0  ;;  %462 = vset.pattern.permute.xlu0 %v497_v7  ;;  %v50_v9 = vld [vmem:[%s650_s2 + $0x10] sm:$0xff]  ;;  %v467_v10 = vld [vmem:[%s649_s1 + $0x8] sm:$0xff]  }
   0x3   :  { %436 = vmatpush3.bf16.msra.mxu0 %v464_v0  ;;  %439 = vmatprep.mubr.msk.bf16.mxu0 %vm125_vm2, %v466_v2  ;;  %v143_v6 = vand.u32 %v465_v1, %v141_v5  ;;  %v48_v8 = vld [vmem:[%s650_s2] sm:$0xff]  ;;  %v468_v11 = vld [vmem:[%s649_s1 + $0x10] sm:$0xff]   ;;  %v49_v12 = vld [vmem:[%s650_s2 + $0x8] sm:$0xff] }
   0x4   :  { %463 = vset.pattern.permute.xlu1 %v497_v7  ;;  %58 = vperm.xlu0 %462, %v48_v8   ;;  %v51_v13 = vld [vmem:[%s650_s2 + $0x18] sm:$0xff]  ;;  %v52_v14 = vld [vmem:[%s650_s2 + $0x20] sm:$0xff]  ;;  %v53_v15 = vld [vmem:[%s650_s2 + $0x28] sm:$0xff] }
   0x5   :  { %437 = vmatprep.subr.bf16.mxu0 %v143_v6  ;;  %68 = vperm.xlu1 %463, %v50_v9  }
   0x7   :  { %438 = vmatpush3.bf16.msra.mxu0 %v143_v6 }
   0x8   :  { %63 = vperm.xlu0 %462, %v49_v12  }
   0x9   :  { %73 = vperm.xlu1 %463, %v51_v13  }
   0xa   :  { %440 = vmatmul.mubr.msk.bf16.vlgmr.msra.gmra.mrb[0].mxu0 %vm125_vm2, %v467_v10 }
   0xb   :  { %443 = vmatprep.mubr.msk.bf16.mxu0 %vm125_vm2, %v468_v11 }
   0xc   :  { %17 = vsyncpa [#allocation6], 0  ;;  %v469_v16 = vld [vmem:[%s649_s1 + $0x18] sm:$0xff]   ;;  %78 = vperm.xlu0 %462, %v52_v14   ;;  %v54_v17 = vld [vmem:[%s650_s2 + $0x30] sm:$0xff]  ;;  %vm278_vm3 = vcmask 523264   ;;  %v219_v33 = vstv %s654_s6  ;;  %vm376_vm0 = vcmask 64512  }
   0xd   :  { %83 = vperm.xlu1 %463, %v53_v15   ;;  %v55_v18 = vld [vmem:[%s650_s2 + $0x38] sm:$0xff]  ;;  %v244_v19 = vld [vmem:[%s652_s4] sm:$0xff]  ;;  %v245_v20 = vld [vmem:[%s652_s4 + $0x8] sm:$0xff]  ;;  %v339_v15 = vstv %s655_s7  ;;  %s498_s12 = smov [#allocation5]   ;;  %vm393_vm1 = vcmask 57344  }
   0xe   :  { %v246_v21 = vld [vmem:[%s652_s4 + $0x10] sm:$0xff]  ;;  %v247_v22 = vld [vmem:[%s652_s4 + $0x18] sm:$0xff]  ;;  %v348_v23 = vld [vmem:[%s653_s5] sm:$0xff]  ;;  %s401_s13 = sshll.u32 %s498_s12, 4  ;;  %s402_s13 = int_to_ptr.vmem [resolvable:$true] %s401_s13 }
   0xf   :  { %v349_v24 = vld [vmem:[%s653_s5 + $0x8] sm:$0xff]  ;;  %v350_v25 = vld [vmem:[%s653_s5 + $0x10] sm:$0xff]  ;;  %v351_v26 = vld [vmem:[%s653_s5 + $0x18] sm:$0xff]  ;;  %s472_s14 = scalar_lea.vmem %s402_s13, 16  ;;  %s476_s15 = scalar_lea.vmem %s402_s13, 32 }
  0x10   :  { %88 = vperm.xlu0 %462, %v54_v17   ;;  %v470_v27 = vld [vmem:[%s651_s3] sm:$0xff]   ;;  %v471_v9 = vld [vmem:[%s651_s3 + $0x8] sm:$0xff]   ;;  %p473_p0 = scmp.ne.s32.totalorder %s402_s13, %s472_s14  ;;  %p477_p1 = scmp.lt.s32.totalorder %s402_s13, %s402_s13 }
  0x11   :  { %93 = vperm.xlu1 %463, %v55_v18   ;;  %455 = vmatprep.mubr.msk.bf16.mxu1 %vm278_vm3, %v470_v27  ;;  %p478_p2 = scmp.lt.s32.totalorder %s476_s15, %s472_s14 }
  0x12   :  { %444 = vmatmul.mubr.msk.bf16.gmra.mrb[4].mxu0 %vm125_vm2, %v469_v16 }
  0x13   :  { %p479_p3 = por %p478_p2, %p477_p1 }
  0x14   :  { %250 = vperm.xlu0 %462, %v244_v19  }
  0x15   :  { %255 = vperm.xlu1 %463, %v245_v20   ;;  %p480_p4 = pnand %p479_p3, %p473_p0 }
  0x18   :  { %260 = vperm.xlu0 %462, %v246_v21  }
  0x19   :  { %265 = vperm.xlu1 %463, %v247_v22  }
  0x1c   :  { %354 = vperm.xlu0 %462, %v348_v23  }
  0x1d   :  { %359 = vperm.xlu1 %463, %v349_v24  }
  0x20   :  { %364 = vperm.xlu0 %462, %v350_v25  }
  0x21   :  { %369 = vperm.xlu1 %463, %v351_v26  }
  0x83   :  { %v59_v28 = vpop.permute.xlu0 %58 }
  0x84   :  { %v69_v29 = vpop.permute.xlu1 %68 }
  0x87   :  { %v64_v30 = vpop.permute.xlu0 %63 }
  0x88   :  { %v74_v31 = vpop.permute.xlu1 %73 }
  0x8b   :  { %v79_v36 = vpop.permute.xlu0 %78 }
  0x8c   :  { %v84_v42 = vpop.permute.xlu1 %83 }
  0x8f   :  { %v89_v49 = vpop.permute.xlu0 %88 }
  0x90   :  { %v94_v57 = vpop.permute.xlu1 %93 }
  0x93   :  { %v251_v10 = vpop.permute.xlu0 %250 }
  0x94   :  { %v256_v11 = vpop.permute.xlu1 %255 }
  0x97   :  { %v261_v12 = vpop.permute.xlu0 %260 }
  0x98   :  { %v266_v13 = vpop.permute.xlu1 %265 }
  0x9b   :  { %v355_v18 = vpop.permute.xlu0 %354 }
  0x9c   :  { %v360_v24 = vpop.permute.xlu1 %359 }
  0xdd   :  { %v441_v32 = vpop.f32.mrb[0].mxu0 }
  0xde   :  { %v188_v34 = vadd.f32 %v441_v32, %v69_v29  ;;  %v179_v35 = vpop.f32.mrb[1].mxu0  ;;  %v365_v32 = vpop.permute.xlu0 %364 }
  0xdf   :  { %v180_v37 = vadd.f32 %v179_v35, %v59_v28  ;;  %v442_v38 = vpop.f32.mrb[2].mxu0 }
  0xe0   :  { %v222_v39 = vmul.f32 %v219_v33, %v188_v34  ;;  %v191_v40 = vadd.f32 %v442_v38, %v74_v31  ;;  %v182_v41 = vpop.f32.mrb[3].mxu0  ;;  %vm213_vm4 = vcmp.ge.f32.partialorder %v188_v34, 0.0 }
  0xe1   :  { %v220_v43 = vmul.f32 %v219_v33, %v180_v37  ;;  %v183_v44 = vadd.f32 %v182_v41, %v64_v30  ;;  %vm211_vm6 = vcmp.ge.f32.partialorder %v180_v37, 0.0 }
  0xe2   :  { %vm214_vm5 = vcmp.ge.f32.partialorder %v191_v40, 0.0  ;;  %v223_v45 = vmul.f32 %v219_v33, %v191_v40  ;;  %v230_v47 = vsel %vm213_vm4, %v188_v34, %v222_v39 }
  0xe3   :  { %v221_v46 = vmul.f32 %v219_v33, %v183_v44  ;;  %vm212_vm7 = vcmp.ge.f32.partialorder %v183_v44, 0.0  ;;  %v228_v51 = vsel %vm211_vm6, %v180_v37, %v220_v43  ;;  %v370_v37 = vpop.permute.xlu1 %369 }
  0xe4   :  { %v231_v48 = vsel %vm214_vm5, %v191_v40, %v223_v45 }
  0xe5   :  { %v445_v50 = vpop.f32.mrb[4].mxu0  ;;  %v229_v52 = vsel %vm212_vm7, %v183_v44, %v221_v46  ;;  %v241_v53 = vpack.c.bf16 %v231_v48, %v230_v47 }
  0xe6   :  { %v204_v54 = vadd.f32 %v445_v50, %v89_v49  ;;  %v195_v55 = vpop.f32.mrb[5].mxu0  ;;  %v240_v56 = vpack.c.bf16 %v229_v52, %v228_v51  ;;  %v391_v51 = vstv %s656_s8 }
  0xe7   :  { %v196_v58 = vadd.f32 %v195_v55, %v79_v36  ;;  %v446_v59 = vpop.f32.mrb[6].mxu0 }
  0xe8   :  { %v226_v60 = vmul.f32 %v219_v33, %v204_v54  ;;  %v207_v61 = vadd.f32 %v446_v59, %v94_v57  ;;  %v198_v62 = vpop.f32.mrb[7].mxu0  ;;  %447 = vmatprep.subr.bf16.mxu1 %v240_v56  ;;  %vm217_vm8 = vcmp.ge.f32.partialorder %v204_v54, 0.0 }
  0xe9   :  { %v224_v63 = vmul.f32 %v219_v33, %v196_v58  ;;  %v199_v0 = vadd.f32 %v198_v62, %v84_v42  ;;  %448 = vmatpush3.bf16.msra.mxu1 %v240_v56  ;;  %vm215_vm9 = vcmp.ge.f32.partialorder %v196_v58, 0.0 }
  0xea   :  { %vm218_vm10 = vcmp.ge.f32.partialorder %v207_v61, 0.0  ;;  %v227_v1 = vmul.f32 %v219_v33, %v207_v61  ;;  %449 = vmatprep.subr.bf16.mxu1 %v241_v53  ;;  %v234_v3 = vsel %vm217_vm8, %v204_v54, %v226_v60 }
  0xeb   :  { %vm216_vm11 = vcmp.ge.f32.partialorder %v199_v0, 0.0  ;;  %v225_v2 = vmul.f32 %v219_v33, %v199_v0  ;;  %v232_v5 = vsel %vm215_vm9, %v196_v58, %v224_v63 }
  0xec   :  { %v235_v4 = vsel %vm218_vm10, %v207_v61, %v227_v1 }
  0xed   :  { %450 = vmatpush3.bf16.msra.mxu1 %v241_v53  ;;  %v233_v6 = vsel %vm216_vm11, %v199_v0, %v225_v2  ;;  %v243_v7 = vpack.c.bf16 %v235_v4, %v234_v3 }
  0xee   :  { %v242_v8 = vpack.c.bf16 %v233_v6, %v232_v5 }
  0xf0   :  { %451 = vmatprep.subr.bf16.mxu1 %v242_v8 }
  0xf1   :  { %452 = vmatpush3.bf16.msra.mxu1 %v242_v8 }
  0xf2   :  { %453 = vmatprep.subr.bf16.mxu1 %v243_v7 }
  0xf5   :  { %454 = vmatpush3.bf16.msra.mxu1 %v243_v7 }
  0xf8   :  { %456 = vmatmul.mubr.msk.bf16.vlgmr.msra.gmra.mrb[0].mxu1 %vm278_vm3, %v471_v9 }
 0x1cb   :  { %v457_v14 = vpop.f32.mrb[0].mxu1 }
 0x1cc   :  { %v328_v16 = vadd.f32 %v457_v14, %v261_v12  ;;  %v319_v17 = vpop.f32.mrb[1].mxu1 }
 0x1cd   :  { %v320_v19 = vadd.f32 %v319_v17, %v251_v10  ;;  %v458_v20 = vpop.f32.mrb[2].mxu1 }
 0x1ce   :  { %vm337_vm12 = vcmp.ge.f32.partialorder %v328_v16, 0.0  ;;  %v342_v21 = vmul.f32 %v339_v15, %v328_v16  ;;  %v331_v22 = vadd.f32 %v458_v20, %v266_v13  ;;  %v322_v23 = vpop.f32.mrb[3].mxu1 }
 0x1cf   :  { %vm335_vm13 = vcmp.ge.f32.partialorder %v320_v19, 0.0  ;;  %v340_v25 = vmul.f32 %v339_v15, %v320_v19  ;;  %v323_v26 = vadd.f32 %v322_v23, %v256_v11 }
 0x1d0   :  { %vm338_vm14 = vcmp.ge.f32.partialorder %v331_v22, 0.0  ;;  %v343_v27 = vmul.f32 %v339_v15, %v331_v22  ;;  %v346_v28 = vsel %vm337_vm12, %v328_v16, %v342_v21 }
 0x1d1   :  { %v344_v29 = vsel %vm335_vm13, %v320_v19, %v340_v25  ;;  %vm336_vm15 = vcmp.ge.f32.partialorder %v323_v26, 0.0  ;;  %v341_v30 = vmul.f32 %v339_v15, %v323_v26  ;;  %v374_v35 = vmul.f32 %v365_v32, %v346_v28 }
 0x1d2   :  { %v372_v31 = vmul.f32 %v355_v18, %v344_v29  ;;  %v347_v33 = vsel %vm338_vm14, %v331_v22, %v343_v27 }
 0x1d3   :  { %v345_v34 = vsel %vm336_vm15, %v323_v26, %v341_v30  ;;  %v375_v39 = vmul.f32 %v370_v37, %v347_v33  ;;  %v380_v42 = vsel %vm376_vm0, %v374_v35, 0.0 }
 0x1d4   :  { %v373_v36 = vmul.f32 %v360_v24, %v345_v34  ;;  %v377_v38 = vsel %vm376_vm0, %v372_v31, 0.0 }
 0x1d5   :  { %v382_v44 = vsel %vm376_vm0, %v375_v39, 0.0 }
 0x1d6   :  { %v378_v40 = vsel %vm376_vm0, %v373_v36, 0.0 }
 0x1d7   :  { %v379_v41 = vadd.f32 %v378_v40, %v377_v38 }
 0x1d9   :  { %v381_v43 = vadd.f32 %v380_v42, %v379_v41 }
 0x1db   :  { %v383_v45 = vadd.f32 %v382_v44, %v381_v43 }
 0x1dd   :  { %v384_v46 = vrot.slane %v383_v45, 4 }
 0x1df   :  { %v385_v47 = vadd.f32 %v384_v46, %v383_v45 }
 0x1e1   :  { %v386_v48 = vrot.slane %v385_v47, 2 }
 0x1e3   :  { %v387_v49 = vadd.f32 %v386_v48, %v385_v47 }
 0x1e5   :  { %v388_v50 = vrot.slane %v387_v49, 1 }
 0x1e7   :  { %v389_v52 = vadd.f32 %v388_v50, %v387_v49 }
 0x1e9   :  { %v392_v53 = vadd.f32 %v391_v51, %v389_v52 }
 0x1eb   :  { %394 = vst.msk [vmem:[#allocation5] sm:$0x1] %vm393_vm1, %v392_v53 }
 0x1ec   :  { %483 = shalt.err (!%p480_p4)
}
 0x1ed   :  { %s484_s1 = scalar_lea.hbm %s657_s9, 16 }
 0x1ee   :  { %p485_p5 = scmp.ne.s32.totalorder %s657_s9, %s484_s1  ;;  %p488_p6 = scmp.lt.u32.totalorder %s484_s1, %s657_s9 }
 0x1f0   :  { %p490_p7 = pnand %p488_p6, %p485_p5 }
 0x1f2   :  { %493 = shalt.err (!%p490_p7)
}
 0x1f3   :  { %404 = dma.vmem_to_hbm [thread:$0]  %s402_s13, 16, %s657_s9, [#allocation6]  }
 0x1f4   :  { %494 = dma.done.wait [#allocation6], 16  }
 0x1f5   :  { %495 = vsyncadd [#allocation6], 4294967280 }
 0x1f6   :  { %408 = vsyncpa [#allocation6], 1 }

</bundles_post_ra>
